<compile_context>
chip_gen: v7x
topology: tpu7x:2x2x1
jax: 0.10.0
libtpu: 0.0.40
codegen_flags: <defaults>
</compile_context>

<pallas_src>
import jax
import jax.numpy as jnp
from jax import lax
from jax.experimental import pallas as pl
from jax.experimental.pallas import tpu as pltpu

# ---- module configuration ---------------------------------------------------
# ProjUpsampling(in_channels=16, filters=8, kernel_size=(5,), rate=4,
#                norm_type='ln', act_func='relu', dropout=0.0,
#                padding='same', use_tf_pad=True, bias=True)
B        = 2
C_IN     = 16
T        = 16
FILTERS  = 8
RATE     = 4
C_OUT    = FILTERS * RATE          # proj conv output channels = filters * rate
K        = 5                       # kernel size (odd, tf-style 'same' pad)
HALF_K   = K // 2
T_UP     = T * RATE
R        = B * T                   # rows of the row-folded 2-D problem
LEFT_PAD = 8                       # sublane-aligned left halo (>= HALF_K, mult. of 8)
ROWS_PAD = LEFT_PAD + R + HALF_K   # staging-scratch rows
LN_EPS   = 1e-5
DTYPE    = jnp.float32


# -----------------------------------------------------------------------------
# Fused kernel: pad-mask + same-pad conv1d (K accumulated matmuls over shifted
# row-windows) + LayerNorm(FILTERS) + ReLU.  Single grid step; output is one
# contiguous (B*T, C_OUT) slab.
# -----------------------------------------------------------------------------
def fused_kernel(lens_ref, x_ref, w_ref, bias_ref, avg_ref, gamma_ref, beta_ref,
                 o_ref, xstage_ref):
    """lens_ref  : SMEM (B,) int32                  valid lengths (scalar prefetch)
       x_ref     : VMEM (R, C_IN)                   input, batch folded into rows
       w_ref     : VMEM (K, C_IN, C_OUT)            conv weight, one slab per tap
       bias_ref  : VMEM (1, C_OUT)
       avg_ref   : VMEM (C_OUT, C_OUT)              block-diag group-averaging matrix
       gamma_ref/beta_ref : VMEM (1, C_OUT)         LN affine tiled to C_OUT lanes
       o_ref     : VMEM (R, C_OUT)                  fused output slab
       xstage_ref: VMEM scratch (ROWS_PAD, C_IN)    staging buffer w/ addressable halos
    """
    # Stage the input once with a single sublane-aligned store.  Halo rows are left
    # uninitialised on purpose: every tap that would read them is masked below, so
    # no zero-fill stores are needed at all.
    xstage_ref[LEFT_PAD:LEFT_PAD + R, :] = x_ref[...].astype(jnp.float32)

    # Hoisted per-row metadata (ONE iota for the whole kernel): batch-local time
    # index t(r) and per-row valid length min(lens[b(r)], T).
    r_iota = lax.broadcasted_iota(jnp.int32, (R, 1), 0)
    t_loc = r_iota
    lim = jnp.minimum(jnp.full((R, 1), T, dtype=jnp.int32), lens_ref[0])
    for b in range(1, B):                            # static unroll, B is tiny
        in_b = r_iota >= b * T
        t_loc = jnp.where(in_b, r_iota - b * T, t_loc)
        lim = jnp.where(in_b, jnp.minimum(lens_ref[b], T), lim)

    # ---- conv1d (stride 1, 'same') as K accumulated matmuls over shifted windows.
    # The per-tap row mask simultaneously implements (a) the 'same' zero padding,
    # (b) cross-batch isolation of the row-folded layout, and (c) the PyTorch
    # masked_fill(pad_mask, 0) of padded time steps (t >= lens[b]).
    acc = None
    for j in range(K):
        d = j - HALF_K
        t_src = t_loc + d
        valid = (t_src >= 0) & (t_src < lim)                       # (R, 1) bool
        window = xstage_ref[LEFT_PAD + d:LEFT_PAD + d + R, :]      # (R, C_IN)
        term = jnp.dot(jnp.where(valid, window, 0.0), w_ref[j],
                       preferred_element_type=jnp.float32)
        acc = term if acc is None else acc + term
    y = acc + bias_ref[...].astype(jnp.float32)                    # (R, C_OUT)

    # ---- LayerNorm over the upsample groups (FILTERS consecutive lanes) + ReLU ----
    # avg_ref = kron(I_RATE, ones(FILTERS,FILTERS)/FILTERS): y @ avg broadcasts each
    # group's mean back to every lane of that group (stays lane-dense, MXU work).
    # TODO(synk): pass precision=lax.Precision.HIGHEST on these two dots if a
    #             tolerance tighter than 1e-4 is ever required.
    mean = jnp.dot(y, avg_ref[...], preferred_element_type=jnp.float32)
    cen = y - mean
    var = jnp.dot(cen * cen, avg_ref[...], preferred_element_type=jnp.float32)
    out = cen * lax.rsqrt(var + LN_EPS)
    out = out * gamma_ref[...].astype(jnp.float32) + beta_ref[...].astype(jnp.float32)
    o_ref[...] = jnp.maximum(out, 0.0).astype(o_ref.dtype)
    # TODO(synk): nn.Dropout is identity here (dropout=0.0 in this config).


# -----------------------------------------------------------------------------
# Wrapper: parameter re-layout (pure plumbing) + one pallas_call.
# -----------------------------------------------------------------------------
def proj_upsampling(x_nct, lens, w_kio, bias, gamma, beta):
    """x_nct: (B, C_IN, T), lens: (B,) int32.
       Returns (out, lens_out) with out: (B, FILTERS, T*RATE)."""
    b_dim = x_nct.shape[0]
    # batch folded into rows: (B, C_IN, T) -> (B*T, C_IN)
    x_rows = jnp.transpose(x_nct, (0, 2, 1)).reshape(b_dim * T, C_IN)

    # parameter preprocessing (would be precomputed once in a real model)
    bias_row = bias.reshape(1, C_OUT)
    gamma_row = jnp.tile(gamma, RATE).reshape(1, C_OUT)   # col c -> gamma[c % FILTERS]
    beta_row = jnp.tile(beta, RATE).reshape(1, C_OUT)
    avg = jnp.kron(jnp.eye(RATE, dtype=jnp.float32),
                   jnp.full((FILTERS, FILTERS), 1.0 / FILTERS, dtype=jnp.float32))

    out2d = pl.pallas_call(
        fused_kernel,
        out_shape=jax.ShapeDtypeStruct((b_dim * T, C_OUT), x_nct.dtype),
        grid_spec=pltpu.PrefetchScalarGridSpec(
            num_scalar_prefetch=1,                        # lens -> SMEM
            grid=(1,),                                    # single step: one DMA/operand
            in_specs=[
                pl.BlockSpec((b_dim * T, C_IN), lambda i, lens: (0, 0)),
                pl.BlockSpec((K, C_IN, C_OUT), lambda i, lens: (0, 0, 0)),
                pl.BlockSpec((1, C_OUT), lambda i, lens: (0, 0)),
                pl.BlockSpec((C_OUT, C_OUT), lambda i, lens: (0, 0)),
                pl.BlockSpec((1, C_OUT), lambda i, lens: (0, 0)),
                pl.BlockSpec((1, C_OUT), lambda i, lens: (0, 0)),
            ],
            out_specs=pl.BlockSpec((b_dim * T, C_OUT), lambda i, lens: (0, 0)),
            scratch_shapes=[
                pltpu.VMEM((ROWS_PAD, C_IN), jnp.float32),   # shifted-window staging
            ],
        ),
        compiler_params=pltpu.CompilerParams(
            dimension_semantics=("arbitrary",)),
    )(lens.astype(jnp.int32), x_rows, w_kio, bias_row, avg, gamma_row, beta_row)

    # (B*T, C_OUT) row-major == (B, T*RATE, FILTERS) row-major; final torch
    # output.transpose(1, 2) gives (B, FILTERS, T*RATE).  Pure layout plumbing.
    out = jnp.transpose(out2d.reshape(b_dim, T_UP, FILTERS), (0, 2, 1))
    return out, lens * RATE


# -----------------------------------------------------------------------------
# Pure-JAX reference of the PyTorch forward, for a correctness check.
# -----------------------------------------------------------------------------
def reference(x_nct, lens, w_kio, bias, gamma, beta):
    mask = (jnp.arange(T)[None, :] < lens[:, None]).astype(x_nct.dtype)
    xm = x_nct * mask[:, None, :]                          # masked_fill(pad_mask, 0)
    w_oik = jnp.transpose(w_kio, (2, 1, 0))                # (C_OUT, C_IN, K) torch layout
    y = lax.conv_general_dilated(
        xm, w_oik, window_strides=(1,), padding=[(HALF_K, HALF_K)],
        dimension_numbers=('NCH', 'OIH', 'NCH'),
        precision=lax.Precision.HIGHEST) + bias[None, :, None]
    y = jnp.transpose(y, (0, 2, 1)).reshape(x_nct.shape[0], T_UP, FILTERS)
    mean = jnp.mean(y, axis=-1, keepdims=True)
    var = jnp.mean(jnp.square(y - mean), axis=-1, keepdims=True)
    y = (y - mean) / jnp.sqrt(var + LN_EPS) * gamma + beta
    y = jnp.maximum(y, 0.0)
    return jnp.transpose(y, (0, 2, 1)), lens * RATE


if __name__ == "__main__":
    key = jax.random.PRNGKey(0)
    kx, kw, kb, kg, kbe = jax.random.split(key, 5)

    x = jax.random.normal(kx, (B, C_IN, T), dtype=DTYPE)   # (B, C, T) like PyTorch
    lens = jnp.array([16, 11], dtype=jnp.int32)

    # Conv1d weight in (K, C_IN, C_OUT) kernel layout; bias (C_OUT,)
    w_kio = 0.1 * jax.random.normal(kw, (K, C_IN, C_OUT), dtype=DTYPE)
    bias = 0.1 * jax.random.normal(kb, (C_OUT,), dtype=DTYPE)
    # LayerNorm affine params over FILTERS
    gamma = 1.0 + 0.1 * jax.random.normal(kg, (FILTERS,), dtype=DTYPE)
    beta = 0.1 * jax.random.normal(kbe, (FILTERS,), dtype=DTYPE)

    out, lens_out = proj_upsampling(x, lens, w_kio, bias, gamma, beta)
    out = jax.block_until_ready(out)
    lens_out = jax.block_until_ready(lens_out)

    ref_out, ref_lens = reference(x, lens, w_kio, bias, gamma, beta)
    assert out.shape == (B, FILTERS, T_UP), out.shape
    assert jnp.all(lens_out == ref_lens)
    assert jnp.allclose(out, ref_out, atol=1e-4, rtol=1e-4), \
        float(jnp.max(jnp.abs(out - ref_out)))

    print("KERNEL_OK")
</pallas_src>

<mosaic_0001>
module attributes {stable_mosaic.version = 11 : i64} {
  func.func @fused_kernel(%arg0: i32, %arg1: memref<2xi32, #tpu.memory_space<smem>>, %arg2: memref<32x16xf32, #tpu.memory_space<vmem>>, %arg3: memref<5x16x32xf32, #tpu.memory_space<vmem>>, %arg4: memref<1x32xf32, #tpu.memory_space<vmem>>, %arg5: memref<32x32xf32, #tpu.memory_space<vmem>>, %arg6: memref<1x32xf32, #tpu.memory_space<vmem>>, %arg7: memref<1x32xf32, #tpu.memory_space<vmem>>, %arg8: memref<32x32xf32, #tpu.memory_space<vmem>>, %arg9: memref<42x16xf32, #tpu.memory_space<vmem>>) attributes {dimension_semantics = [#tpu.dimension_semantics<arbitrary>], iteration_bounds = array<i64: 1>, scalar_prefetch = 1 : i64, scratch_operands = 1 : i64, tpu.core_type = #tpu.core_type<tc>, window_params = [{pipeline_mode = #tpu.pipeline_mode<synchronous>, transform_indices = @transform_0, window_bounds = array<i64: 32, 16>}, {pipeline_mode = #tpu.pipeline_mode<synchronous>, transform_indices = @transform_1, window_bounds = array<i64: 5, 16, 32>}, {pipeline_mode = #tpu.pipeline_mode<synchronous>, transform_indices = @transform_2, window_bounds = array<i64: 1, 32>}, {pipeline_mode = #tpu.pipeline_mode<synchronous>, transform_indices = @transform_3, window_bounds = array<i64: 32, 32>}, {pipeline_mode = #tpu.pipeline_mode<synchronous>, transform_indices = @transform_4, window_bounds = array<i64: 1, 32>}, {pipeline_mode = #tpu.pipeline_mode<synchronous>, transform_indices = @transform_5, window_bounds = array<i64: 1, 32>}, {pipeline_mode = #tpu.pipeline_mode<synchronous>, transform_indices = @transform_6, window_bounds = array<i64: 32, 32>}]} {
    %c0 = arith.constant 0 : index
    %c0_0 = arith.constant 0 : index
    %0 = vector.load %arg2[%c0, %c0_0] : memref<32x16xf32, #tpu.memory_space<vmem>>, vector<32x16xf32>
    %c8 = arith.constant 8 : index
    %c0_1 = arith.constant 0 : index
    %1 = vector.load %arg9[%c8, %c0_1] : memref<42x16xf32, #tpu.memory_space<vmem>>, vector<32x16xf32>
    tpu.vector_store %arg9[%c8, %c0_1], %0 {strides = array<i32>} : memref<42x16xf32, #tpu.memory_space<vmem>>, vector<32x16xf32>,
    %2 = tpu.iota {dimensions = array<i32: 0>} : vector<32x1xi32>
    %c16_i32 = arith.constant 16 : i32
    %3 = vector.broadcast %c16_i32 : i32 to vector<32x1xi32>
    %c0_2 = arith.constant 0 : index
    %4 = memref.load %arg1[%c0_2] : memref<2xi32, #tpu.memory_space<smem>>
    %5 = vector.broadcast %4 : i32 to vector<32x1xi32>
    %6 = arith.minsi %3, %5 : vector<32x1xi32>
    %c16_i32_3 = arith.constant 16 : i32
    %7 = vector.broadcast %c16_i32_3 : i32 to vector<32x1xi32>
    %8 = arith.cmpi sge, %2, %7 : vector<32x1xi32>
    %c16_i32_4 = arith.constant 16 : i32
    %9 = vector.broadcast %c16_i32_4 : i32 to vector<32x1xi32>
    %10 = arith.subi %2, %9 : vector<32x1xi32>
    %11 = arith.select %8, %10, %2 : vector<32x1xi1>, vector<32x1xi32>
    %c1 = arith.constant 1 : index
    %12 = memref.load %arg1[%c1] : memref<2xi32, #tpu.memory_space<smem>>
    %c16_i32_5 = arith.constant 16 : i32
    %13 = arith.minsi %12, %c16_i32_5 : i32
    %14 = vector.broadcast %13 : i32 to vector<32x1xi32>
    %15 = arith.select %8, %14, %6 : vector<32x1xi1>, vector<32x1xi32>
    %c-2_i32 = arith.constant -2 : i32
    %16 = vector.broadcast %c-2_i32 : i32 to vector<32x1xi32>
    %17 = arith.addi %11, %16 : vector<32x1xi32>
    %c0_i32 = arith.constant 0 : i32
    %18 = vector.broadcast %c0_i32 : i32 to vector<32x1xi32>
    %19 = arith.cmpi sge, %17, %18 : vector<32x1xi32>
    %20 = arith.cmpi slt, %17, %15 : vector<32x1xi32>
    %21 = arith.andi %19, %20 : vector<32x1xi1>
    %c6 = arith.constant 6 : index
    %c0_6 = arith.constant 0 : index
    %22 = vector.load %arg9[%c6, %c0_6] : memref<42x16xf32, #tpu.memory_space<vmem>>, vector<32x16xf32>
    %cst = arith.constant 0.000000e+00 : f32
    %23 = vector.shape_cast %21 : vector<32x1xi1> to vector<32x1xi1>
    %24 = vector.broadcast %23 : vector<32x1xi1> to vector<32x16xi1>
    %25 = vector.broadcast %cst : f32 to vector<32x16xf32>
    %26 = arith.select %24, %22, %25 : vector<32x16xi1>, vector<32x16xf32>
    %c0_7 = arith.constant 0 : index
    %c0_8 = arith.constant 0 : index
    %c0_9 = arith.constant 0 : index
    %27 = vector.load %arg3[%c0_7, %c0_8, %c0_9] : memref<5x16x32xf32, #tpu.memory_space<vmem>>, vector<1x16x32xf32>
    %28 = vector.shape_cast %27 : vector<1x16x32xf32> to vector<16x32xf32>
    %cst_10 = arith.constant dense<0.000000e+00> : vector<32x32xf32>
    %29 = tpu.matmul %26, %28, %cst_10 {dimension_numbers = #tpu.dot_dimension_numbers<[1], [0], [0], [1], [0, 0, 1, 1], [], []>} : vector<32x16xf32>, vector<16x32xf32>, vector<32x32xf32> -> vector<32x32xf32>
    %c-1_i32 = arith.constant -1 : i32
    %30 = vector.broadcast %c-1_i32 : i32 to vector<32x1xi32>
    %31 = arith.addi %11, %30 : vector<32x1xi32>
    %c0_i32_11 = arith.constant 0 : i32
    %32 = vector.broadcast %c0_i32_11 : i32 to vector<32x1xi32>
    %33 = arith.cmpi sge, %31, %32 : vector<32x1xi32>
    %34 = arith.cmpi slt, %31, %15 : vector<32x1xi32>
    %35 = arith.andi %33, %34 : vector<32x1xi1>
    %c7 = arith.constant 7 : index
    %c0_12 = arith.constant 0 : index
    %36 = vector.load %arg9[%c7, %c0_12] : memref<42x16xf32, #tpu.memory_space<vmem>>, vector<32x16xf32>
    %cst_13 = arith.constant 0.000000e+00 : f32
    %37 = vector.shape_cast %35 : vector<32x1xi1> to vector<32x1xi1>
    %38 = vector.broadcast %37 : vector<32x1xi1> to vector<32x16xi1>
    %39 = vector.broadcast %cst_13 : f32 to vector<32x16xf32>
    %40 = arith.select %38, %36, %39 : vector<32x16xi1>, vector<32x16xf32>
    %c1_14 = arith.constant 1 : index
    %c0_15 = arith.constant 0 : index
    %c0_16 = arith.constant 0 : index
    %41 = vector.load %arg3[%c1_14, %c0_15, %c0_16] : memref<5x16x32xf32, #tpu.memory_space<vmem>>, vector<1x16x32xf32>
    %42 = vector.shape_cast %41 : vector<1x16x32xf32> to vector<16x32xf32>
    %cst_17 = arith.constant dense<0.000000e+00> : vector<32x32xf32>
    %43 = tpu.matmul %40, %42, %cst_17 {dimension_numbers = #tpu.dot_dimension_numbers<[1], [0], [0], [1], [0, 0, 1, 1], [], []>} : vector<32x16xf32>, vector<16x32xf32>, vector<32x32xf32> -> vector<32x32xf32>
    %44 = arith.addf %29, %43 : vector<32x32xf32>
    %c0_i32_18 = arith.constant 0 : i32
    %45 = vector.broadcast %c0_i32_18 : i32 to vector<32x1xi32>
    %46 = arith.addi %11, %45 : vector<32x1xi32>
    %c0_i32_19 = arith.constant 0 : i32
    %47 = vector.broadcast %c0_i32_19 : i32 to vector<32x1xi32>
    %48 = arith.cmpi sge, %46, %47 : vector<32x1xi32>
    %49 = arith.cmpi slt, %46, %15 : vector<32x1xi32>
    %50 = arith.andi %48, %49 : vector<32x1xi1>
    %c8_20 = arith.constant 8 : index
    %c0_21 = arith.constant 0 : index
    %51 = vector.load %arg9[%c8_20, %c0_21] : memref<42x16xf32, #tpu.memory_space<vmem>>, vector<32x16xf32>
    %cst_22 = arith.constant 0.000000e+00 : f32
    %52 = vector.shape_cast %50 : vector<32x1xi1> to vector<32x1xi1>
    %53 = vector.broadcast %52 : vector<32x1xi1> to vector<32x16xi1>
    %54 = vector.broadcast %cst_22 : f32 to vector<32x16xf32>
    %55 = arith.select %53, %51, %54 : vector<32x16xi1>, vector<32x16xf32>
    %c2 = arith.constant 2 : index
    %c0_23 = arith.constant 0 : index
    %c0_24 = arith.constant 0 : index
    %56 = vector.load %arg3[%c2, %c0_23, %c0_24] : memref<5x16x32xf32, #tpu.memory_space<vmem>>, vector<1x16x32xf32>
    %57 = vector.shape_cast %56 : vector<1x16x32xf32> to vector<16x32xf32>
    %cst_25 = arith.constant dense<0.000000e+00> : vector<32x32xf32>
    %58 = tpu.matmul %55, %57, %cst_25 {dimension_numbers = #tpu.dot_dimension_numbers<[1], [0], [0], [1], [0, 0, 1, 1], [], []>} : vector<32x16xf32>, vector<16x32xf32>, vector<32x32xf32> -> vector<32x32xf32>
    %59 = arith.addf %44, %58 : vector<32x32xf32>
    %c1_i32 = arith.constant 1 : i32
    %60 = vector.broadcast %c1_i32 : i32 to vector<32x1xi32>
    %61 = arith.addi %11, %60 : vector<32x1xi32>
    %c0_i32_26 = arith.constant 0 : i32
    %62 = vector.broadcast %c0_i32_26 : i32 to vector<32x1xi32>
    %63 = arith.cmpi sge, %61, %62 : vector<32x1xi32>
    %64 = arith.cmpi slt, %61, %15 : vector<32x1xi32>
    %65 = arith.andi %63, %64 : vector<32x1xi1>
    %c9 = arith.constant 9 : index
    %c0_27 = arith.constant 0 : index
    %66 = vector.load %arg9[%c9, %c0_27] : memref<42x16xf32, #tpu.memory_space<vmem>>, vector<32x16xf32>
    %cst_28 = arith.constant 0.000000e+00 : f32
    %67 = vector.shape_cast %65 : vector<32x1xi1> to vector<32x1xi1>
    %68 = vector.broadcast %67 : vector<32x1xi1> to vector<32x16xi1>
    %69 = vector.broadcast %cst_28 : f32 to vector<32x16xf32>
    %70 = arith.select %68, %66, %69 : vector<32x16xi1>, vector<32x16xf32>
    %c3 = arith.constant 3 : index
    %c0_29 = arith.constant 0 : index
    %c0_30 = arith.constant 0 : index
    %71 = vector.load %arg3[%c3, %c0_29, %c0_30] : memref<5x16x32xf32, #tpu.memory_space<vmem>>, vector<1x16x32xf32>
    %72 = vector.shape_cast %71 : vector<1x16x32xf32> to vector<16x32xf32>
    %cst_31 = arith.constant dense<0.000000e+00> : vector<32x32xf32>
    %73 = tpu.matmul %70, %72, %cst_31 {dimension_numbers = #tpu.dot_dimension_numbers<[1], [0], [0], [1], [0, 0, 1, 1], [], []>} : vector<32x16xf32>, vector<16x32xf32>, vector<32x32xf32> -> vector<32x32xf32>
    %74 = arith.addf %59, %73 : vector<32x32xf32>
    %c2_i32 = arith.constant 2 : i32
    %75 = vector.broadcast %c2_i32 : i32 to vector<32x1xi32>
    %76 = arith.addi %11, %75 : vector<32x1xi32>
    %c0_i32_32 = arith.constant 0 : i32
    %77 = vector.broadcast %c0_i32_32 : i32 to vector<32x1xi32>
    %78 = arith.cmpi sge, %76, %77 : vector<32x1xi32>
    %79 = arith.cmpi slt, %76, %15 : vector<32x1xi32>
    %80 = arith.andi %78, %79 : vector<32x1xi1>
    %c10 = arith.constant 10 : index
    %c0_33 = arith.constant 0 : index
    %81 = vector.load %arg9[%c10, %c0_33] : memref<42x16xf32, #tpu.memory_space<vmem>>, vector<32x16xf32>
    %cst_34 = arith.constant 0.000000e+00 : f32
    %82 = vector.shape_cast %80 : vector<32x1xi1> to vector<32x1xi1>
    %83 = vector.broadcast %82 : vector<32x1xi1> to vector<32x16xi1>
    %84 = vector.broadcast %cst_34 : f32 to vector<32x16xf32>
    %85 = arith.select %83, %81, %84 : vector<32x16xi1>, vector<32x16xf32>
    %c4 = arith.constant 4 : index
    %c0_35 = arith.constant 0 : index
    %c0_36 = arith.constant 0 : index
    %86 = vector.load %arg3[%c4, %c0_35, %c0_36] : memref<5x16x32xf32, #tpu.memory_space<vmem>>, vector<1x16x32xf32>
    %87 = vector.shape_cast %86 : vector<1x16x32xf32> to vector<16x32xf32>
    %cst_37 = arith.constant dense<0.000000e+00> : vector<32x32xf32>
    %88 = tpu.matmul %85, %87, %cst_37 {dimension_numbers = #tpu.dot_dimension_numbers<[1], [0], [0], [1], [0, 0, 1, 1], [], []>} : vector<32x16xf32>, vector<16x32xf32>, vector<32x32xf32> -> vector<32x32xf32>
    %89 = arith.addf %74, %88 : vector<32x32xf32>
    %c0_38 = arith.constant 0 : index
    %c0_39 = arith.constant 0 : index
    %90 = vector.load %arg4[%c0_38, %c0_39] : memref<1x32xf32, #tpu.memory_space<vmem>>, vector<1x32xf32>
    %91 = vector.broadcast %90 : vector<1x32xf32> to vector<32x32xf32>
    %92 = arith.addf %89, %91 : vector<32x32xf32>
    %c0_40 = arith.constant 0 : index
    %c0_41 = arith.constant 0 : index
    %93 = vector.load %arg5[%c0_40, %c0_41] : memref<32x32xf32, #tpu.memory_space<vmem>>, vector<32x32xf32>
    %cst_42 = arith.constant dense<0.000000e+00> : vector<32x32xf32>
    %94 = tpu.matmul %92, %93, %cst_42 {dimension_numbers = #tpu.dot_dimension_numbers<[1], [0], [0], [1], [0, 0, 1, 1], [], []>} : vector<32x32xf32>, vector<32x32xf32>, vector<32x32xf32> -> vector<32x32xf32>
    %95 = arith.subf %92, %94 : vector<32x32xf32>
    %96 = arith.mulf %95, %95 : vector<32x32xf32>
    %c0_43 = arith.constant 0 : index
    %c0_44 = arith.constant 0 : index
    %97 = vector.load %arg5[%c0_43, %c0_44] : memref<32x32xf32, #tpu.memory_space<vmem>>, vector<32x32xf32>
    %cst_45 = arith.constant dense<0.000000e+00> : vector<32x32xf32>
    %98 = tpu.matmul %96, %97, %cst_45 {dimension_numbers = #tpu.dot_dimension_numbers<[1], [0], [0], [1], [0, 0, 1, 1], [], []>} : vector<32x32xf32>, vector<32x32xf32>, vector<32x32xf32> -> vector<32x32xf32>
    %cst_46 = arith.constant 9.99999974E-6 : f32
    %99 = vector.broadcast %cst_46 : f32 to vector<32x32xf32>
    %100 = arith.addf %98, %99 : vector<32x32xf32>
    %101 = math.rsqrt %100 : vector<32x32xf32>
    %102 = arith.mulf %95, %101 : vector<32x32xf32>
    %c0_47 = arith.constant 0 : index
    %c0_48 = arith.constant 0 : index
    %103 = vector.load %arg6[%c0_47, %c0_48] : memref<1x32xf32, #tpu.memory_space<vmem>>, vector<1x32xf32>
    %104 = vector.broadcast %103 : vector<1x32xf32> to vector<32x32xf32>
    %105 = arith.mulf %102, %104 : vector<32x32xf32>
    %c0_49 = arith.constant 0 : index
    %c0_50 = arith.constant 0 : index
    %106 = vector.load %arg7[%c0_49, %c0_50] : memref<1x32xf32, #tpu.memory_space<vmem>>, vector<1x32xf32>
    %107 = vector.broadcast %106 : vector<1x32xf32> to vector<32x32xf32>
    %108 = arith.addf %105, %107 : vector<32x32xf32>
    %cst_51 = arith.constant 0.000000e+00 : f32
    %109 = vector.broadcast %cst_51 : f32 to vector<32x32xf32>
    %110 = arith.maximumf %108, %109 : vector<32x32xf32>
    %c0_52 = arith.constant 0 : index
    %c0_53 = arith.constant 0 : index
    %111 = vector.load %arg8[%c0_52, %c0_53] : memref<32x32xf32, #tpu.memory_space<vmem>>, vector<32x32xf32>
    tpu.vector_store %arg8[%c0_52, %c0_53], %110 {strides = array<i32>} : memref<32x32xf32, #tpu.memory_space<vmem>>, vector<32x32xf32>,
    return
  }
  func.func @transform_0(%arg0: i32, %arg1: memref<2xi32, #tpu.memory_space<smem>>) -> (i32, i32) {
    %c0_i32 = arith.constant 0 : i32
    %c0_i32_0 = arith.constant 0 : i32
    %c0_i32_1 = arith.constant 0 : i32
    return %c0_i32, %c0_i32_0 : i32, i32
  }
  func.func @transform_1(%arg0: i32, %arg1: memref<2xi32, #tpu.memory_space<smem>>) -> (i32, i32, i32) {
    %c0_i32 = arith.constant 0 : i32
    %c0_i32_0 = arith.constant 0 : i32
    %c0_i32_1 = arith.constant 0 : i32
    %c0_i32_2 = arith.constant 0 : i32
    return %c0_i32, %c0_i32_0, %c0_i32_1 : i32, i32, i32
  }
  func.func @transform_2(%arg0: i32, %arg1: memref<2xi32, #tpu.memory_space<smem>>) -> (i32, i32) {
    %c0_i32 = arith.constant 0 : i32
    %c0_i32_0 = arith.constant 0 : i32
    %c0_i32_1 = arith.constant 0 : i32
    return %c0_i32, %c0_i32_0 : i32, i32
  }
  func.func @transform_3(%arg0: i32, %arg1: memref<2xi32, #tpu.memory_space<smem>>) -> (i32, i32) {
    %c0_i32 = arith.constant 0 : i32
    %c0_i32_0 = arith.constant 0 : i32
    %c0_i32_1 = arith.constant 0 : i32
    return %c0_i32, %c0_i32_0 : i32, i32
  }
  func.func @transform_4(%arg0: i32, %arg1: memref<2xi32, #tpu.memory_space<smem>>) -> (i32, i32) {
    %c0_i32 = arith.constant 0 : i32
    %c0_i32_0 = arith.constant 0 : i32
    %c0_i32_1 = arith.constant 0 : i32
    return %c0_i32, %c0_i32_0 : i32, i32
  }
  func.func @transform_5(%arg0: i32, %arg1: memref<2xi32, #tpu.memory_space<smem>>) -> (i32, i32) {
    %c0_i32 = arith.constant 0 : i32
    %c0_i32_0 = arith.constant 0 : i32
    %c0_i32_1 = arith.constant 0 : i32
    return %c0_i32, %c0_i32_0 : i32, i32
  }
  func.func @transform_6(%arg0: i32, %arg1: memref<2xi32, #tpu.memory_space<smem>>) -> (i32, i32) {
    %c0_i32 = arith.constant 0 : i32
    %c0_i32_0 = arith.constant 0 : i32
    %c0_i32_1 = arith.constant 0 : i32
    return %c0_i32, %c0_i32_0 : i32, i32
  }
}

</mosaic_0001>

<bundles_post_ra>
// kernel: tpu_custom_call.1
= control target key start
LH: loop header
LB: loop body
LE: loop exit
PB: predicated region body
PF: predicated region fallthrough
CT: control target
= control target key end

     0   :  { %s1550_s0 = inlined_call_operand.vmem [shape: s32[2], index: 0, kind: input, shape index: {}]   ;;  %s1551_s1 = inlined_call_operand.vmem [shape: f32[32,16], index: 1, kind: input, shape index: {}]   ;;  %s1552_s2 = inlined_call_operand.hbm [shape: f32[5,16,32], index: 2, kind: input, shape index: {}]   ;;  %s1553_s3 = inlined_call_operand.vmem [shape: f32[1,32], index: 3, kind: input, shape index: {}]   ;;  %s1554_s4 = inlined_call_operand.vmem [shape: f32[32,32], index: 4, kind: input, shape index: {}]   ;;  %s1555_s5 = inlined_call_operand.vmem [shape: f32[1,32], index: 5, kind: input, shape index: {}]   ;;  %s1556_s6 = inlined_call_operand.vmem [shape: f32[1,32], index: 6, kind: input, shape index: {}]   ;;  %s1557_s7 = inlined_call_operand.hbm [shape: f32[32,32], index: 7, kind: output, shape index: {}]  }
   0x1   :  { %s12_s26 = sshll.u32 %s1550_s0, 4  ;;  %s13_s26 = int_to_ptr.vmem [resolvable:$true] %s12_s26 }
   0x2   :  { %s1246_s27 = scalar_lea.vmem %s13_s26, 16  ;;  %p1251_p1 = scmp.lt.s32.totalorder %s13_s26, %s13_s26 }
   0x3   :  { %p1247_p0 = scmp.ne.s32.totalorder %s13_s26, %s1246_s27  ;;  %p1252_p2 = scmp.lt.s32.totalorder %s1246_s27, %s1246_s27 }
   0x5   :  { %p1253_p3 = por %p1252_p2, %p1251_p1 }
   0x7   :  { %p1254_p4 = pnand %p1253_p3, %p1247_p0 }
   0x9   :  { %1257 = shalt.err (!%p1254_p4)  }
   0xa   :  { %s1308_s28 = smov [#allocation4]  }
   0xb   :  { %15 = dma.vmem_to_smem %s13_s26, 16, %s1308_s28, [#allocation3] }
   0xc   :  { %1302 = dma.done.wait [#allocation3], 16 }
   0xd   :  { %1303 = vsyncadd [#allocation3], 4294967280 }
   0xe   :  { %17 = sfence }
   0xf   :  { %18 = vsyncpa [#allocation6], 0 }
  0x10   :  { %19 = vsyncpa [#allocation7], 0  ;;  %s1309_s29 = smov [#allocation5]   ;;  %s1258_s9 = scalar_lea.hbm %s1552_s2, 1280 }
  0x11   :  { %s27_s30 = sshll.u32 %s1309_s29, 4  ;;  %p1259_p5 = scmp.ne.s32.totalorder %s1552_s2, %s1258_s9  ;;  %s28_s30 = int_to_ptr.vmem [resolvable:$true] %s27_s30 }
  0x12   :  { %p1262_p6 = scmp.lt.u32.totalorder %s1258_s9, %s1552_s2 }
  0x14   :  { %p1264_p7 = pnand %p1262_p6, %p1259_p5 }
  0x16   :  { %1267 = shalt.err (!%p1264_p7)
}
  0x17   :  { %s1268_s14 = scalar_lea.vmem %s28_s30, 1280  ;;  %p1273_p9 = scmp.lt.s32.totalorder %s28_s30, %s28_s30 }
  0x18   :  { %p1269_p8 = scmp.ne.s32.totalorder %s28_s30, %s1268_s14  ;;  %p1274_p10 = scmp.lt.s32.totalorder %s1268_s14, %s1268_s14 }
  0x1a   :  { %p1275_p11 = por %p1274_p10, %p1273_p9 }
  0x1c   :  { %p1276_p12 = pnand %p1275_p11, %p1269_p8 }
  0x1e   :  { %1279 = shalt.err (!%p1276_p12)
}
  0x1f   :  { %s1310_s15 = smov 128   ;;  %s1311_s16 = smov 8  }
  0x20   :  { %33 = dma.hbm_to_vmem [thread:$0]  %s1552_s2, 1280, %s28_s30, [#allocation6], %s1310_s15, %s1310_s15, %s1311_s16  }
  0x21   :  { %1304 = dma.done.wait [#allocation6], 1280  }
  0x22   :  { %1305 = vsyncadd [#allocation6], 4294966016  ;;  %v54_v0 = vlaneseq  ;;  %s59_s19 = sld [smem:[#allocation4]]  ;;  %s1025_s20 = sld [smem:[#allocation4 + $0x1]]  ;;  %vm49_vm0 = vcmask 130048   ;;  %v114_v5 = vld [vmem:[#allocation5] sm:$0xff] }
  0x23   :  { %v115_v6 = vld [vmem:[#allocation5 + $0x8] sm:$0xff]  ;;  %v45_v7 = vld [vmem:[%s1551_s1] sm:$0xff]  ;;  %v374_v11 = vld [vmem:[#allocation5 + $0x20] sm:$0xff] }
  0x24   :  { %v1371_v1 = vshrl.u32 %v54_v0, 7  ;;  %v1185_v10 = vpack.c.bf16 %v115_v6, %v114_v5  ;;  %50 = vst.msk [vmem:[#allocation2 + $0x8] sm:$0xff] %vm49_vm0, %v45_v7  ;;  %v375_v12 = vld [vmem:[#allocation5 + $0x28] sm:$0xff]  ;;  %v46_v13 = vld [vmem:[%s1551_s1 + $0x8] sm:$0xff]  ;;  %v47_v16 = vld [vmem:[%s1551_s1 + $0x10] sm:$0xff] }
  0x25   :  { %v1189_v15 = vpack.c.bf16 %v375_v12, %v374_v11  ;;  %51 = vst.msk [vmem:[#allocation2 + $0x10] sm:$0xff] %vm49_vm0, %v46_v13  ;;  %v48_v17 = vld [vmem:[%s1551_s1 + $0x18] sm:$0xff]  ;;  %52 = vst.msk [vmem:[#allocation2 + $0x18] sm:$0xff] %vm49_vm0, %v47_v16  ;;  %v149_v22 = vld [vmem:[#allocation5 + $0x10] sm:$0xff] }
  0x26   :  { %v58_v2 = vadd.s32 24, %v1371_v1  ;;  %v82_v3 = vadd.s32 4294967294, %v1371_v1  ;;  %v1376_v4 = vadd.s32 8, %v1371_v1  ;;  %1186 = vmatprep.subr.bf16.mxu0 %v1185_v10  ;;  %53 = vst.msk [vmem:[#allocation2 + $0x20] sm:$0xff] %vm49_vm0, %v48_v17  ;;  %v116_v19 = vadd.s32 4294967295, %v1371_v1  ;;  %v150_v23 = vld [vmem:[#allocation5 + $0x18] sm:$0xff] }
  0x27   :  { %1188 = vmatpush3.bf16.msra.mxu0 %v1185_v10  ;;  %v510_v24 = vld [vmem:[#allocation5 + $0x30] sm:$0xff]  ;;  %v511_v25 = vld [vmem:[#allocation5 + $0x38] sm:$0xff]  ;;  %v1181_v27 = vpack.c.bf16 %v150_v23, %v149_v22  ;;  %v646_v45 = vld [vmem:[#allocation5 + $0x40] sm:$0xff]  ;;  %v477_v54 = vadd.s32 1, %v1371_v1  ;;  %v613_v10 = vadd.s32 2, %v1371_v1 }
  0x28   :  { %v60_v8 = vstv %s59_s19  ;;  %p75_p13 = scmp.lt.s32.totalorder %s1025_s20, 16  ;;  %v1381_v9 = vadd.s32 4294967280, %v58_v2  ;;  %vm86_vm2 = vcmp.ge.s32.totalorder %v82_v3, 0  ;;  %v83_v18 = vadd.s32 4294967294, %v1376_v4  ;;  %1190 = vmatprep.subr.bf16.mxu0 %v1189_v15  ;;  %v760_v28 = vld [vmem:[%s1554_s4] sm:$0xff]  ;;  %v761_v29 = vld [vmem:[%s1554_s4 + $0x8] sm:$0xff] }
  0x29   :  { %vm61_vm1 = vcmp.lt.s32.totalorder %v60_v8, 16  ;;  %vm120_vm7 = vcmp.ge.s32.totalorder %v116_v19, 0  ;;  %v117_v30 = vadd.s32 4294967295, %v1376_v4  ;;  %v1193_v33 = vpack.c.bf16 %v511_v25, %v510_v24  ;;  %1182 = vmatprep.subr.bf16.mxu1 %v1181_v27  ;;  %v647_v50 = vld [vmem:[#allocation5 + $0x48] sm:$0xff]  ;;  %v1046_v31 = vld [vmem:[%s1553_s3] ss:$0 sm:$0xff] }
  0x2a   :  { %v1387_v14 = vsel %vm61_vm1, %v60_v8, 16  ;;  %s1567_s20 = smov (!%p75_p13, %s1025_s20), 16  ;;  %v85_v21 = vadd.s32 4294967294, %v1381_v9  ;;  %1184 = vmatpush3.bf16.msra.mxu1 %v1181_v27  ;;  %v119_v37 = vadd.s32 4294967295, %v1381_v9  ;;  %v1429_v38 = vpack.c.bf16 %v761_v29, %v760_v28  ;;  %v763_v24 = vld [vmem:[%s1554_s4 + $0x18] sm:$0xff] }
  0x2b   :  { %vm90_vm3 = vcmp.lt.s32.totalorder %v82_v3, %v1387_v14  ;;  %v1401_v20 = vstv %s1567_s20  ;;  %vm91_vm6 = vcmp.lt.s32.totalorder %v83_v18, %v1387_v14  ;;  %vm124_vm8 = vcmp.lt.s32.totalorder %v116_v19, %v1387_v14  ;;  %v98_v32 = vld [vmem:[#allocation2 + $0x6] sm:$0xff] }
  0x2c   :  { %vm92_vm4 = vcmp.lt.s32.totalorder %v82_v3, %v1401_v20  ;;  %vm1406_vm5 = vmand %vm86_vm2, %vm90_vm3  ;;  %vm93_vm10 = vcmp.lt.s32.totalorder %v85_v21, %v1401_v20  ;;  %v99_v35 = vld [vmem:[#allocation2 + $0xe] sm:$0xff]  ;;  %vm126_vm11 = vcmp.lt.s32.totalorder %v116_v19, %v1401_v20  ;;  %v100_v40 = vld [vmem:[#allocation2 + $0x16] sm:$0xff]  ;;  %vm349_vm12 = vcmp.lt.s32.totalorder %v1371_v1, %v1387_v14  ;;  %1202 = vmatprep.subr.bf16.mxu1 %v1429_v38 }
  0x2d   :  { %vm1420_vm9 = vmand %vm86_vm2, %vm92_vm4  ;;  %v110_v34 = vsel %vm1406_vm5, %v98_v32, 0.0  ;;  %v357_v36 = vld [vmem:[#allocation2 + $0x8] sm:$0xff]  ;;  %v111_v39 = vsel %vm91_vm6, %v99_v35, 0.0  ;;  %v101_v41 = vld [vmem:[#allocation2 + $0x1e] sm:$0xff]  ;;  %vm125_vm14 = vcmp.lt.s32.totalorder %v117_v30, %v1387_v14  ;;  %vm350_vm1 = vcmp.lt.s32.totalorder %v1376_v4, %v1387_v14 }
  0x2e   :  { %1117 = vmatprep.mubr.msk.f32.mxu0 %vm49_vm0, %v110_v34  ;;  %vm1439_vm13 = vmand %vm120_vm7, %vm124_vm8  ;;  %v112_v43 = vsel %vm1420_vm9, %v100_v40, 0.0  ;;  %v113_v44 = vsel %vm93_vm10, %v101_v41, 0.0  ;;  %v132_v47 = vld [vmem:[#allocation2 + $0x7] sm:$0xff]  ;;  %v369_v48 = vsel %vm349_vm12, %v357_v36, 0.0  ;;  %v358_v49 = vld [vmem:[#allocation2 + $0x10] sm:$0xff]  ;;  %vm127_vm2 = vcmp.lt.s32.totalorder %v119_v37, %v1401_v20 }
  0x2f   :  { %1118 = vmatmul.mubr.msk.f32.vlgmr.msra.gmra.mrb[0].mxu0 %vm49_vm0, %v111_v39  ;;  %vm1454_vm15 = vmand %vm120_vm7, %vm126_vm11  ;;  %v144_v51 = vsel %vm1439_vm13, %v132_v47, 0.0  ;;  %v133_v52 = vld [vmem:[#allocation2 + $0xf] sm:$0xff]  ;;  %vm351_vm3 = vcmp.lt.s32.totalorder %v1371_v1, %v1401_v20  ;;  %v359_v53 = vld [vmem:[#allocation2 + $0x18] sm:$0xff]  ;;  %v370_v59 = vsel %vm350_vm1, %v358_v49, 0.0  ;;  %vm352_vm4 = vcmp.lt.s32.totalorder %v1381_v9, %v1401_v20 }
  0x30   :  { %1192 = vmatpush3.bf16.msra.mxu0 %v1189_v15  ;;  %1120 = vmatprep.mubr.msk.f32.mxu0 %vm49_vm0, %v112_v43  ;;  %v145_v55 = vsel %vm125_vm14, %v133_v52, 0.0  ;;  %v134_v56 = vld [vmem:[#allocation2 + $0x17] sm:$0xff]  ;;  %v135_v57 = vld [vmem:[#allocation2 + $0x1f] sm:$0xff]  ;;  %v371_v61 = vsel %vm351_vm3, %v359_v53, 0.0  ;;  %v1197_v63 = vpack.c.bf16 %v647_v50, %v646_v45  ;;  %v478_v0 = vadd.s32 1, %v1376_v4  ;;  %v493_v2 = vld [vmem:[#allocation2 + $0x9] sm:$0xff] }
  0x31   :  { %1194 = vmatprep.subr.bf16.mxu0 %v1193_v33  ;;  %1107 = vmatprep.mubr.msk.f32.mxu1 %vm49_vm0, %v144_v51  ;;  %v146_v58 = vsel %vm1454_vm15, %v134_v56, 0.0  ;;  %v147_v60 = vsel %vm127_vm2, %v135_v57, 0.0  ;;  %v360_v62 = vld [vmem:[#allocation2 + $0x20] sm:$0xff]  ;;  %vm485_vm5 = vcmp.lt.s32.totalorder %v477_v54, %v1387_v14  ;;  %v494_v6 = vld [vmem:[#allocation2 + $0x11] sm:$0xff]  ;;  %v480_v7 = vadd.s32 1, %v1381_v9 }
  0x32   :  { %1108 = vmatmul.mubr.msk.f32.vlgmr.msra.gmra.mrb[0].mxu1 %vm49_vm0, %v145_v55  ;;  %v372_v3 = vsel %vm352_vm4, %v360_v62, 0.0  ;;  %v505_v5 = vsel %vm485_vm5, %v493_v2, 0.0  ;;  %vm486_vm6 = vcmp.lt.s32.totalorder %v478_v0, %v1387_v14  ;;  %vm487_vm7 = vcmp.lt.s32.totalorder %v477_v54, %v1401_v20  ;;  %v495_v8 = vld [vmem:[#allocation2 + $0x19] sm:$0xff]  ;;  %v496_v13 = vld [vmem:[#allocation2 + $0x21] sm:$0xff]  ;;  %v629_v16 = vld [vmem:[#allocation2 + $0xa] sm:$0xff] }
  0x33   :  { %1121 = vmatmul.mubr.msk.f32.gmra.mrb[2].mxu0 %vm49_vm0, %v113_v44  ;;  %1110 = vmatprep.mubr.msk.f32.mxu1 %vm49_vm0, %v146_v58  ;;  %v506_v11 = vsel %vm486_vm6, %v494_v6, 0.0  ;;  %v507_v12 = vsel %vm487_vm7, %v495_v8, 0.0  ;;  %vm488_vm8 = vcmp.lt.s32.totalorder %v480_v7, %v1401_v20  ;;  %v614_v15 = vadd.s32 2, %v1376_v4  ;;  %v630_v18 = vld [vmem:[#allocation2 + $0x12] sm:$0xff]  ;;  %v631_v21 = vld [vmem:[#allocation2 + $0x1a] sm:$0xff]  ;;  %v632_v23 = vld [vmem:[#allocation2 + $0x22] sm:$0xff] }
  0x34   :  { %1127 = vmatprep.mubr.msk.f32.mxu0 %vm49_vm0, %v369_v48  ;;  %1204 = vmatpush3.bf16.msra.mxu1 %v1429_v38  ;;  %vm621_vm9 = vcmp.lt.s32.totalorder %v613_v10, %v1387_v14  ;;  %v508_v1 = vsel %vm488_vm8, %v496_v13, 0.0  ;;  %v616_v19 = vadd.s32 2, %v1381_v9  ;;  %vm623_vm11 = vcmp.lt.s32.totalorder %v613_v10, %v1401_v20  ;;  %v762_v9 = vld [vmem:[%s1554_s4 + $0x10] sm:$0xff] }
  0x35   :  { %v641_v17 = vsel %vm621_vm9, %v629_v16, 0.0  ;;  %vm622_vm10 = vcmp.lt.s32.totalorder %v614_v15, %v1387_v14  ;;  %v643_v22 = vsel %vm623_vm11, %v631_v21, 0.0  ;;  %v1205_v25 = vpack.c.bf16 %v763_v24, %v762_v9 }
  0x36   :  { %1111 = vmatmul.mubr.msk.f32.gmra.mrb[2].mxu1 %vm49_vm0, %v147_v60  ;;  %v642_v4 = vsel %vm622_vm10, %v630_v18, 0.0  ;;  %vm624_vm12 = vcmp.lt.s32.totalorder %v616_v19, %v1401_v20 }
  0x37   :  { %1128 = vmatmul.mubr.msk.f32.vlgmr.msra.gmra.mrb[0].mxu0 %vm49_vm0, %v370_v59  ;;  %v644_v14 = vsel %vm624_vm12, %v632_v23, 0.0  ;;  %1206 = vmatprep.subr.bf16.mxu1 %v1205_v25 }
  0x38   :  { %1196 = vmatpush3.bf16.msra.mxu0 %v1193_v33  ;;  %1130 = vmatprep.mubr.msk.f32.mxu0 %vm49_vm0, %v371_v61 }
  0x39   :  { %1198 = vmatprep.subr.bf16.mxu0 %v1197_v63  ;;  %1208 = vmatpush3.bf16.msra.mxu1 %v1205_v25 }
  0x3a   :  { %1210 = vmatprep.subr.bf16.mxu1 %v1429_v38 }
  0x3b   :  { %1131 = vmatmul.mubr.msk.f32.gmra.mrb[2].mxu0 %vm49_vm0, %v372_v3 }
  0x3c   :  { %1137 = vmatprep.mubr.msk.f32.mxu0 %vm49_vm0, %v505_v5  ;;  %v1056_v5 = vld [vmem:[%s1556_s6] ss:$0 sm:$0xff] }
  0x3f   :  { %1138 = vmatmul.mubr.msk.f32.vlgmr.msra.gmra.mrb[0].mxu0 %vm49_vm0, %v506_v11 }
  0x40   :  { %1200 = vmatpush3.bf16.msra.mxu0 %v1197_v63  ;;  %1140 = vmatprep.mubr.msk.f32.mxu0 %vm49_vm0, %v507_v12  ;;  %v1055_v63 = vld [vmem:[%s1555_s5] ss:$0 sm:$0xff]  ;;  %s1312_s5 = smov [#allocation8]  }
  0x41   :  { %s1010_s17 = sshll.u32 %s1312_s5, 4  ;;  %s1011_s17 = int_to_ptr.vmem [resolvable:$true] %s1010_s17 }
  0x42   :  { %s1280_s6 = scalar_lea.vmem %s1011_s17, 512  ;;  %p1285_p1 = scmp.lt.s32.totalorder %s1011_s17, %s1011_s17 }
  0x43   :  { %1141 = vmatmul.mubr.msk.f32.gmra.mrb[2].mxu0 %vm49_vm0, %v508_v1  ;;  %p1281_p0 = scmp.ne.s32.totalorder %s1011_s17, %s1280_s6  ;;  %p1286_p2 = scmp.lt.s32.totalorder %s1280_s6, %s1280_s6 }
  0x44   :  { %1147 = vmatprep.mubr.msk.f32.mxu0 %vm49_vm0, %v641_v17 }
  0x45   :  { %p1287_p3 = por %p1286_p2, %p1285_p1 }
  0x47   :  { %1148 = vmatmul.mubr.msk.f32.vlgmr.msra.gmra.mrb[0].mxu0 %vm49_vm0, %v642_v4  ;;  %p1288_p4 = pnand %p1287_p3, %p1281_p0 }
  0x48   :  { %1150 = vmatprep.mubr.msk.f32.mxu0 %vm49_vm0, %v643_v22 }
  0x4b   :  { %1151 = vmatmul.mubr.msk.f32.gmra.mrb[2].mxu0 %vm49_vm0, %v644_v14  ;;  %vm764_vm0 = vcmask 261120  }
 0x105   :  { %v1109_v20 = vpop.f32.mrb[0].mxu1 }
 0x106   :  { %v229_v26 = vpop.f32.mrb[1].mxu1 }
 0x109   :  { %v1112_v27 = vpop.f32.mrb[2].mxu1 }
 0x10a   :  { %v239_v28 = vpop.f32.mrb[3].mxu1 }
 0x11a   :  { %v1149_v29 = vpop.f32.mrb[0].mxu0 }
 0x11b   :  { %v1217_v30 = vadd.f32 %v1149_v29, %v1109_v20  ;;  %v726_v32 = vpop.f32.mrb[1].mxu0 }
 0x11c   :  { %v1218_v33 = vadd.f32 %v726_v32, %v229_v26 }
 0x11d   :  { %v757_v36 = vadd.f32 %v1217_v30, %v1046_v31 }
 0x11e   :  { %v756_v34 = vadd.f32 %v1218_v33, %v1046_v31  ;;  %v1152_v35 = vpop.f32.mrb[2].mxu0 }
 0x11f   :  { %v1219_v37 = vadd.f32 %v1152_v35, %v1112_v27  ;;  %v736_v39 = vpop.f32.mrb[3].mxu0 }
 0x120   :  { %v1220_v40 = vadd.f32 %v736_v39, %v239_v28  ;;  %1161 = vmatprep.mubr.msk.f32.mxu1 %vm764_vm0, %v756_v34 }
 0x121   :  { %1162 = vmatmul.mubr.msk.f32.vlgmr.msra.gmra.mrb[4].mxu1 %vm764_vm0, %v757_v36  ;;  %v759_v42 = vadd.f32 %v1219_v37, %v1046_v31 }
 0x122   :  { %v758_v41 = vadd.f32 %v1220_v40, %v1046_v31  ;;  %1212 = vmatpush3.bf16.msra.mxu1 %v1429_v38 }
 0x123   :  { %1214 = vmatprep.subr.bf16.mxu1 %v1205_v25 }
 0x124   :  { %1164 = vmatprep.mubr.msk.f32.mxu1 %vm764_vm0, %v758_v41 }
 0x125   :  { %1165 = vmatmul.mubr.msk.f32.gmra.mrb[6].mxu1 %vm764_vm0, %v759_v42 }
 0x126   :  { %1216 = vmatpush3.bf16.msra.mxu1 %v1205_v25 }
 0x1f4   :  { %v1163_v43 = vpop.f32.mrb[4].mxu1 }
 0x1f5   :  { %v863_v44 = vsub.f32 %v757_v36, %v1163_v43  ;;  %v843_v45 = vpop.f32.mrb[5].mxu1 }
 0x1f6   :  { %v862_v46 = vsub.f32 %v756_v34, %v843_v45 }
 0x1f7   :  { %v867_v49 = vmul.f32 %v863_v44, %v863_v44 }
 0x1f8   :  { %v866_v47 = vmul.f32 %v862_v46, %v862_v46  ;;  %v1166_v48 = vpop.f32.mrb[6].mxu1 }
 0x1f9   :  { %v865_v50 = vsub.f32 %v759_v42, %v1166_v48  ;;  %v853_v51 = vpop.f32.mrb[7].mxu1 }
 0x1fa   :  { %v864_v52 = vsub.f32 %v758_v41, %v853_v51  ;;  %1175 = vmatprep.mubr.msk.f32.mxu1 %vm764_vm0, %v866_v47 }
 0x1fb   :  { %1176 = vmatmul.mubr.msk.f32.vlgmr.msra.gmra.mrb[8].mxu1 %vm764_vm0, %v867_v49  ;;  %v869_v53 = vmul.f32 %v865_v50, %v865_v50 }
 0x1fc   :  { %v868_v38 = vmul.f32 %v864_v52, %v864_v52 }
 0x1fe   :  { %1178 = vmatprep.mubr.msk.f32.mxu1 %vm764_vm0, %v868_v38 }
 0x1ff   :  { %1179 = vmatmul.mubr.msk.f32.gmra.mrb[10].mxu1 %vm764_vm0, %v869_v53 }
 0x2ce   :  { %v1177_v54 = vpop.f32.mrb[8].mxu1 }
 0x2cf   :  { %v954_v55 = vadd.f32 1e-05, %v1177_v54  ;;  %v948_v56 = vpop.f32.mrb[9].mxu1 }
 0x2d0   :  { %v949_v57 = vadd.f32 1e-05, %v948_v56 }
 0x2d1   :  { %1238 = vrsqrt.f32 %v954_v55 }
 0x2d2   :  { %1240 = vrsqrt.f32 %v949_v57  ;;  %v1180_v58 = vpop.f32.mrb[10].mxu1 }
 0x2d3   :  { %v964_v59 = vadd.f32 1e-05, %v1180_v58  ;;  %v958_v60 = vpop.f32.mrb[11].mxu1 }
 0x2d4   :  { %v959_v61 = vadd.f32 1e-05, %v958_v60 }
 0x2d5   :  { %1242 = vrsqrt.f32 %v964_v59 }
 0x2d6   :  { %1244 = vrsqrt.f32 %v959_v61 }
 0x2db   :  { %v1239_v62 = vpop.eup %1238 }
 0x2dc   :  { %v1241_v0 = vpop.eup %1240  ;;  %v972_v2 = vmul.f32 %v1239_v62, %v863_v44 }
 0x2dd   :  { %v971_v3 = vmul.f32 %v1241_v0, %v862_v46 }
 0x2de   :  { %v983_v6 = vmul.f32 %v1055_v63, %v972_v2 }
 0x2df   :  { %v1243_v7 = vpop.eup %1242  ;;  %v982_v8 = vmul.f32 %v1055_v63, %v971_v3 }
 0x2e0   :  { %v1245_v10 = vpop.eup %1244  ;;  %v974_v11 = vmul.f32 %v1243_v7, %v865_v50  ;;  %v994_v12 = vadd.f32 %v1056_v5, %v983_v6 }
 0x2e1   :  { %v973_v13 = vmul.f32 %v1245_v10, %v864_v52  ;;  %v993_v15 = vadd.f32 %v1056_v5, %v982_v8 }
 0x2e2   :  { %v985_v16 = vmul.f32 %v1055_v63, %v974_v11  ;;  %v998_v1 = vmax.f32 %v994_v12, 0.0 }
 0x2e3   :  { %v984_v17 = vmul.f32 %v1055_v63, %v973_v13  ;;  %v997_v18 = vmax.f32 %v993_v15, 0.0 }
 0x2e4   :  { %v996_v19 = vadd.f32 %v1056_v5, %v985_v16  ;;  %1002 = vst.msk [vmem:[#allocation8 + $0x8] sm:$0xff] %vm764_vm0, %v998_v1 }
 0x2e5   :  { %v995_v21 = vadd.f32 %v1056_v5, %v984_v17  ;;  %1001 = vst.msk [vmem:[#allocation8] sm:$0xff] %vm764_vm0, %v997_v18 }
 0x2e6   :  { %v1000_v4 = vmax.f32 %v996_v19, 0.0 }
 0x2e7   :  { %v999_v22 = vmax.f32 %v995_v21, 0.0 }
 0x2e8   :  { %1004 = vst.msk [vmem:[#allocation8 + $0x18] sm:$0xff] %vm764_vm0, %v1000_v4 }
 0x2e9   :  { %1003 = vst.msk [vmem:[#allocation8 + $0x10] sm:$0xff] %vm764_vm0, %v999_v22 }
 0x2ea   :  { %1291 = shalt.err (!%p1288_p4)
}
 0x2eb   :  { %s1292_s20 = scalar_lea.hbm %s1557_s7, 512 }
 0x2ec   :  { %p1293_p5 = scmp.ne.s32.totalorder %s1557_s7, %s1292_s20  ;;  %p1296_p6 = scmp.lt.u32.totalorder %s1292_s20, %s1557_s7 }
 0x2ee   :  { %p1298_p7 = pnand %p1296_p6, %p1293_p5 }
 0x2f0   :  { %1301 = shalt.err (!%p1298_p7)
}
 0x2f1   :  { %1016 = dma.vmem_to_hbm [thread:$0]  %s1011_s17, 512, %s1557_s7, [#allocation7], %s1310_s15, %s1310_s15, %s1311_s16  }
 0x2f2   :  { %1306 = dma.done.wait [#allocation7], 512  }
 0x2f3   :  { %1307 = vsyncadd [#allocation7], 4294966784 }
 0x2f4   :  { %1020 = vsyncpa [#allocation6], 1 }
 0x2f5   :  { %1021 = vsyncpa [#allocation7], 1 }

</bundles_post_ra>
